<compile_context>
chip_gen: v7x
topology: tpu7x:2x2x1
jax: 0.10.0
libtpu: 0.0.40
codegen_flags: <defaults>
</compile_context>

<pallas_src>
import functools

import numpy as np
import jax
import jax.numpy as jnp
from jax.experimental import pallas as pl
from jax.experimental.pallas import tpu as pltpu


_VMEM_BUDGET = 28 * 1024 * 1024   # cap on double-buffered tile footprint
_VMEM_LIMIT = 32 * 1024 * 1024    # scoped-VMEM limit, safe on v5e/v6e/v7x
_BF16_MIN_N = 2048                # use bf16 operands at/above this signal length


def _round_up(x: int, m: int) -> int:
    return ((x + m - 1) // m) * m


def _largest_divisor_tile(total: int, cap: int, align: int) -> int:
    """Largest multiple of `align` that divides `total` and is <= cap."""
    cap = max(align, min(cap, total))
    for t in range(cap - cap % align, 0, -align):
        if total % t == 0:
            return t
    return align


@functools.lru_cache(maxsize=None)
def _dft_weight(n: int, k_pad: int, n_pad: int, use_bf16: bool) -> jax.Array:
    """Fused rfft weight [k_pad, n_pad]: cols [0:nh]=cos, [nh:2nh]=-sin, rest 0."""
    nh = n // 2 + 1
    j = np.arange(n, dtype=np.float64)
    k = np.arange(nh, dtype=np.float64)
    theta = (2.0 * np.pi / n) * np.outer(j, k)
    w = np.zeros((k_pad, n_pad), dtype=np.float32)
    w[:n, :nh] = np.cos(theta)
    w[:n, nh:2 * nh] = -np.sin(theta)
    return jnp.asarray(w, dtype=jnp.bfloat16 if use_bf16 else jnp.float32)


def dft_kernel(x_ref, w_ref, o_ref):
    """Tiled x @ W, accumulating straight into the (k-invariant) output block."""
    prod = jnp.dot(x_ref[...], w_ref[...], preferred_element_type=jnp.float32)

    @pl.when(pl.program_id(2) == 0)
    def _():
        o_ref[...] = prod

    @pl.when(pl.program_id(2) != 0)
    def _():
        o_ref[...] += prod


def _choose_tiles(b_pad, k_pad, n_pad, x_item, w_item):
    def fp(tm, tk, tn):
        # double-buffered x tile + W tile + f32 output tile
        return 2 * (tm * tk * x_item + tk * tn * w_item + tm * tn * 4)

    tm = _largest_divisor_tile(b_pad, 512, 8)

    if fp(tm, k_pad, n_pad) <= _VMEM_BUDGET:
        # W fully VMEM-resident: constant W index_map -> one DMA total.
        tk, tn = k_pad, n_pad
    else:
        tk = _largest_divisor_tile(k_pad, 1024, 128)
        tn = _largest_divisor_tile(n_pad, 1024, 128)
        while fp(tm, tk, tn) > _VMEM_BUDGET:
            if tk >= tn and tk > 128:
                tk = _largest_divisor_tile(k_pad, tk // 2, 128)
            elif tn > 128:
                tn = _largest_divisor_tile(n_pad, tn // 2, 128)
            elif tm > 8:
                tm = _largest_divisor_tile(b_pad, tm // 2, 8)
            else:
                break

    # v7x has 2 TensorCores: make sure the "parallel" (i, j) part of the grid
    # has >= 2 steps when there is non-trivial work to split.
    if (b_pad // tm) * (n_pad // tn) == 1:
        if b_pad >= 16:
            tm = _largest_divisor_tile(b_pad, tm // 2, 8)
        elif n_pad >= 256:
            tn = _largest_divisor_tile(n_pad, tn // 2, 128)
    return tm, tk, tn


def freq_shift(x: jax.Array,
               probability: float = 1.0,
               shift: int = 1,
               features: int = 0) -> jax.Array:
    """FreqShift forward: complex64 FFT of x (shape [B, N]) along the last axis."""
    # TODO(synk): probability < 1.0 stochastically skips the transform in the
    # torch module (global RNG); this kernel always applies it (== prob 1.0).
    # TODO(synk): the per-feature roll is skipped; the module default
    # features=0 selects no features (and shift=1 -> roll by 0), a no-op.
    if features != 0:
        raise NotImplementedError("FreqShift Pallas kernel implements features=0 only")

    B, N = x.shape
    nh = N // 2 + 1
    ncols = 2 * nh

    use_bf16 = N >= _BF16_MIN_N
    in_dtype = jnp.bfloat16 if use_bf16 else jnp.float32
    x = x.astype(in_dtype)
    x_item = jnp.dtype(in_dtype).itemsize

    b_pad = _round_up(B, 8)
    k_pad = _round_up(N, 128)
    n_pad = _round_up(ncols, 128)

    tm, tk, tn = _choose_tiles(b_pad, k_pad, n_pad, x_item, x_item)

    w = _dft_weight(N, k_pad, n_pad, use_bf16)

    if b_pad != B or k_pad != N:
        # Reduction-axis padding must be explicit zeros for correctness.
        x_in = jnp.zeros((b_pad, k_pad), in_dtype).at[:B, :N].set(x)
    else:
        x_in = x  # no extra HBM round trip when already aligned

    grid = (b_pad // tm, n_pad // tn, k_pad // tk)

    out = pl.pallas_call(
        dft_kernel,
        out_shape=jax.ShapeDtypeStruct((b_pad, n_pad), jnp.float32),
        grid_spec=pltpu.PrefetchScalarGridSpec(
            num_scalar_prefetch=0,
            grid=grid,
            in_specs=[
                pl.BlockSpec((tm, tk), lambda i, j, k: (i, k)),   # x tile
                pl.BlockSpec((tk, tn), lambda i, j, k: (k, j)),   # W tile
            ],
            out_specs=pl.BlockSpec((tm, tn), lambda i, j, k: (i, j)),
        ),
        compiler_params=pltpu.CompilerParams(
            dimension_semantics=("parallel", "parallel", "arbitrary"),
            vmem_limit_bytes=_VMEM_LIMIT,
        ),
    )(x_in, w)

    if b_pad != B:
        out = out[:B]
    re_h = out[:, :nh]
    im_h = out[:, nh:ncols]

    # Conjugate-symmetric upper half of the real-input spectrum (cheap XLA
    # flip/concat; no extra MXU work).
    mir = slice(1, N - nh + 1)
    re = jnp.concatenate([re_h, jnp.flip(re_h[:, mir], axis=1)], axis=1)
    im = jnp.concatenate([im_h, -jnp.flip(im_h[:, mir], axis=1)], axis=1)
    return jax.lax.complex(re, im)   # complex64 == torch.polar(abs(fft), angle(fft))


if __name__ == "__main__":
    key = jax.random.PRNGKey(0)
    k1, k2 = jax.random.split(key)

    # Small 2-D inputs [batch, signal_len], consistent with `transfer[:, feature]`
    # indexing in the module. One lane-aligned shape and one odd shape that
    # exercises the padding + mirror paths.
    for shape, kk in (((8, 128), k1), ((4, 16), k2)):
        x = jax.random.normal(kk, shape, dtype=jnp.float32)
        out = jax.block_until_ready(freq_shift(x))
        ref = jnp.fft.fft(x)
        assert out.shape == ref.shape and out.dtype == jnp.complex64
        assert jnp.allclose(out, ref, atol=1e-3, rtol=1e-3), shape

    print("KERNEL_OK")
</pallas_src>

<mosaic_0001>
module attributes {stable_mosaic.version = 11 : i64} {
  func.func @dft_kernel(%arg0: i32, %arg1: i32, %arg2: i32, %arg3: memref<8x128xf32, #tpu.memory_space<vmem>>, %arg4: memref<128x128xf32, #tpu.memory_space<vmem>>, %arg5: memref<8x128xf32, #tpu.memory_space<vmem>>) attributes {dimension_semantics = [#tpu.dimension_semantics<parallel>, #tpu.dimension_semantics<parallel>, #tpu.dimension_semantics<arbitrary>], iteration_bounds = array<i64: 1, 2, 1>, scalar_prefetch = 0 : i64, scratch_operands = 0 : i64, tpu.core_type = #tpu.core_type<tc>, window_params = [{transform_indices = @transform_0, window_bounds = array<i64: 8, 128>}, {transform_indices = @transform_1, window_bounds = array<i64: 128, 128>}, {transform_indices = @transform_2, window_bounds = array<i64: 8, 128>}]} {
    %c0 = arith.constant 0 : index
    %c0_0 = arith.constant 0 : index
    %0 = vector.load %arg3[%c0, %c0_0] : memref<8x128xf32, #tpu.memory_space<vmem>>, vector<8x128xf32>
    %c0_1 = arith.constant 0 : index
    %c0_2 = arith.constant 0 : index
    %1 = vector.load %arg4[%c0_1, %c0_2] : memref<128x128xf32, #tpu.memory_space<vmem>>, vector<128x128xf32>
    %cst = arith.constant dense<0.000000e+00> : vector<8x128xf32>
    %2 = tpu.matmul %0, %1, %cst {dimension_numbers = #tpu.dot_dimension_numbers<[1], [0], [0], [1], [0, 0, 1, 1], [], []>} : vector<8x128xf32>, vector<128x128xf32>, vector<8x128xf32> -> vector<8x128xf32>
    %c0_i32 = arith.constant 0 : i32
    %3 = arith.cmpi eq, %arg2, %c0_i32 : i32
    %4 = arith.extui %3 : i1 to i32
    %c0_i32_3 = arith.constant 0 : i32
    %5 = arith.cmpi ne, %4, %c0_i32_3 : i32
    scf.if %5 {
      %c0_6 = arith.constant 0 : index
      %c0_7 = arith.constant 0 : index
      %9 = vector.load %arg5[%c0_6, %c0_7] : memref<8x128xf32, #tpu.memory_space<vmem>>, vector<8x128xf32>
      tpu.vector_store %arg5[%c0_6, %c0_7], %2 {strides = array<i32>} : memref<8x128xf32, #tpu.memory_space<vmem>>, vector<8x128xf32>,
    } else {
    }
    %c0_i32_4 = arith.constant 0 : i32
    %6 = arith.cmpi ne, %arg2, %c0_i32_4 : i32
    %7 = arith.extui %6 : i1 to i32
    %c0_i32_5 = arith.constant 0 : i32
    %8 = arith.cmpi ne, %7, %c0_i32_5 : i32
    scf.if %8 {
      %c0_6 = arith.constant 0 : index
      %c0_7 = arith.constant 0 : index
      %9 = vector.load %arg5[%c0_6, %c0_7] : memref<8x128xf32, #tpu.memory_space<vmem>>, vector<8x128xf32>
      %10 = arith.addf %9, %2 : vector<8x128xf32>
      %c0_8 = arith.constant 0 : index
      %c0_9 = arith.constant 0 : index
      %11 = vector.load %arg5[%c0_8, %c0_9] : memref<8x128xf32, #tpu.memory_space<vmem>>, vector<8x128xf32>
      tpu.vector_store %arg5[%c0_8, %c0_9], %10 {strides = array<i32>} : memref<8x128xf32, #tpu.memory_space<vmem>>, vector<8x128xf32>,
    } else {
    }
    return
  }
  func.func @transform_0(%arg0: i32, %arg1: i32, %arg2: i32) -> (i32, i32) {
    %c0_i32 = arith.constant 0 : i32
    return %arg0, %arg2 : i32, i32
  }
  func.func @transform_1(%arg0: i32, %arg1: i32, %arg2: i32) -> (i32, i32) {
    %c0_i32 = arith.constant 0 : i32
    return %arg2, %arg1 : i32, i32
  }
  func.func @transform_2(%arg0: i32, %arg1: i32, %arg2: i32) -> (i32, i32) {
    %c0_i32 = arith.constant 0 : i32
    return %arg0, %arg1 : i32, i32
  }
}

</mosaic_0001>

<bundles_post_ra>
// kernel: tpu_custom_call.1
= control target key start
LH: loop header
LB: loop body
LE: loop exit
PB: predicated region body
PF: predicated region fallthrough
CT: control target
= control target key end

     0   :  { %7 = vsyncpa [#allocation3], 0  ;;  %s1004_s0 = inlined_call_operand.hbm [shape: f32[8,128], index: 0, kind: input, shape index: {}]   ;;  %s1005_s1 = inlined_call_operand.hbm [shape: f32[128,256], index: 1, kind: input, shape index: {}]   ;;  %s1006_s2 = inlined_call_operand.hbm [shape: f32[8,256], index: 2, kind: output, shape index: {}]  }
   0x1   :  { %8 = vsyncpa [#allocation6], 0 }
   0x2   :  { %10 = vsyncpa [#allocation6 + $0x1], 0 }
   0x3   :  { %11 = vsyncpa [#allocation4], 0 }
   0x4   :  { %13 = vsyncpa [#allocation4 + $0x1], 0  ;;  %s766_s9 = smov 0   ;;  %s768_s10 = smov 0  }
   0x5   :  { %s770_s11 = smov 0   ;;  %s772_s12 = smov 0  }
   0x6   :  { %s774_s13 = smov 0   ;;  %s776_s14 = smov 0  }
   0x7 LB: > { %s426_s15 = sadd.s32 4294967295, %s740_s14   ;;  %s427_s16 = sadd.s32 4294967294, %s740_s14   ;;  %s740_s14 = sphi %s776_s14, %s19_s14   ;;  %s736_s13 = sphi %s774_s13, %s1034_s13   ;;  %s732_s12 = sphi %s772_s12, %s1033_s12   ;;  %s728_s11 = sphi %s770_s11, %s1032_s11   ;;  %s724_s10 = sphi %s768_s10, %s1031_s10   ;;  %s720_s9 = sphi %s766_s9, %s1030_s9  }
   0x8   : > { %s75_s17 = sadd.s32 1, %s728_s11  ;;  %p82_p0 = scmp.ne.s32.totalorder %s728_s11, %s724_s10 }
   0x9   : > { %p83_p1 = scmp.eq.s32.totalorder %s740_s14, 0  ;;  %p88_p2 = scmp.ne.s32.totalorder %s724_s10, %s720_s9 }
   0xa   : > { %p804_p3 = scmp.eq.s32.totalorder %s426_s15, 0  ;;  %p114_p4 = scmp.eq.s32.totalorder %s426_s15, 1 }
   0xb   : > { %p808_p5 = por %p83_p1, %p82_p0  ;;  %p120_p6 = scmp.eq.s32.totalorder %s427_s16, 1 }
   0xc   : > { %s1013_s18 = scalar_select %p804_p3, 1, 0 }
   0xd   : > { %p814_p7 = por %p804_p3, %p88_p2  ;;  %p818_p8 = por %p114_p4, %p82_p0 }
   0xe   : > { %p822_p9 = por %p120_p6, %p88_p2  ;;  %p428_p10 = scmp.ge.s32.totalorder %s740_s14, 1 }
   0xf   : > { %s1015_s20 = scalar_select %p814_p7, 1, 0 }
  0x10   : > { %s1016_s21 = scalar_select %p818_p8, 1, 0 }
  0x11   : > { %s1017_s22 = scalar_select %p822_p9, 1, 0 }
  0x12   : > { %p127_p11 = scmp.lt.s32.totalorder %s740_s14, 3  ;;  %s742_s24 = smov [#allocation2]  }
  0x13   : > { %s143_s25 = sshll.u32 %s742_s24, 4  ;;  %p538_p1 = scmp.lt.s32.totalorder %s740_s14, 2  ;;  %s144_s25 = int_to_ptr.vmem [resolvable:$true] %s143_s25 }
  0x14   : > { %p829_p13 = pnand %p428_p10, %p127_p11  ;;  %s34_s28 = sadd.s32 1, %s736_s13 }
  0x15   : > { %p838_p4 = pnand %p538_p1, %p808_p5  ;;  %p849_p6 = scmp.ge.s32.totalorder %s34_s28, 2 }
  0x16   : > { %s1018_s23 = scalar_select %p829_p13, 1, 0 }
  0x17   : > { %p525_p0 = pneg %p829_p13  ;;  %s154_s30 = sand.u32 1, %s728_s11  }
  0x18   : > { %s1019_s26 = scalar_select %p838_p4, 1, 0 }
  0x19   : > { %p844_p2 = pnand %p525_p0, %p804_p3  ;;  %s596_s5 = scalar_lea.hbm %s1004_s0, 128 }
  0x1a   : > { %s1021_s29 = scalar_select %p849_p6, 1, 0 }
  0x1b   : > { %p597_p5 = scmp.ne.s32.totalorder %s1004_s0, %s596_s5  ;;  %p598_p10 = pneg %p844_p2 }
  0x1c   : > { %p603_p0 = scmp.lt.u32.totalorder %s596_s5, %s1004_s0 }
  0x1d   : > { %p599_p11 = pnand %p598_p10, %p597_p5 }
  0x1f   : > { %p600_p1 = pneg %p599_p11 }
  0x21   : > { %p605_p12 = pnand %p603_p0, %p600_p1 }
  0x23   : > { %608 = shalt.err (!%p605_p12)
}
  0x24   : > { %s609_s16 = scalar_lea.vmem %s144_s25, 128  ;;  %p617_p3 = scmp.lt.s32.totalorder %s144_s25, %s144_s25 }
  0x25   : > { %p610_p9 = scmp.ne.s32.totalorder %s144_s25, %s609_s16  ;;  %p618_p13 = scmp.lt.s32.totalorder %s609_s16, %s609_s16 }
  0x27   : > { %p612_p8 = pnand %p610_p9, %p598_p10  ;;  %p619_p4 = por %p618_p13, %p617_p3 }
  0x29   : > { %p613_p7 = pneg %p612_p8 }
  0x2b   : > { %p620_p6 = pnand %p619_p4, %p613_p7 }
  0x2d   : > { %623 = shalt.err (!%p620_p6)
}
  0x2e   : > { %528 = dma.hbm_to_vmem [thread:$0]  (!%p844_p2), %s1004_s0, 128, %s144_s25, [#allocation3]  }
  0x2f   : > { %p1022_p9 = scmp.ne.s32.totalorder %s1021_s29, 0  ;;  %s431_s3 = sshll.u32 %s154_s30, 7 }
  0x30   : > { %s432_s5 = sshll.u32 %s736_s13, 7  ;;  %s158_s8 = scalar_lea.vmem [#allocation5], %s431_s3 }
  0x31   : > { %s1036_s28 = smov (%p1022_p9, %s34_s28), 0  ;;  %s880_s7 = scalar_lea.hbm %s1005_s1, %s432_s5 }
  0x32   : > { %s71_s4 = ssub.s32 %s736_s13, %s1036_s28  ;;  %s167_s15 = sshll.u32 %s158_s8, 4  ;;  %s887_s15 = int_to_ptr.vmem [resolvable:$true] %s167_s15 }
  0x33   : > { %p73_p3 = scmp.eq.s32.totalorder %s71_s4, 0  ;;  %s889_s29 = scalar_lea.sflag [#allocation6], %s154_s30 }
  0x34   : > { %s624_s16 = scalar_lea.hbm %s880_s7, 2048  ;;  %p1023_p8 = scmp.ne.s32.totalorder %s1019_s26, 0 }
  0x35   : > { %s885_s25 = scalar_select %p73_p3, %s728_s11, %s75_s17  }
  0x36   : > { %p625_p7 = scmp.ne.s32.totalorder %s880_s7, %s624_s16  ;;  %p626_p12 = pneg %p1023_p8 }
  0x37   : > { %s629_s3 = scalar_lea.hbm %s1005_s1, 4096  ;;  %p630_p2 = scmp.lt.u32.totalorder %s880_s7, %s1005_s1 }
  0x38   : > { %p627_p13 = pnand %p626_p12, %p625_p7  ;;  %p631_p6 = scmp.lt.u32.totalorder %s629_s3, %s624_s16 }
  0x39   : > { %p633_p10 = scmp.lt.u32.totalorder %s624_s16, %s880_s7 }
  0x3a   : > { %p628_p4 = pneg %p627_p13  ;;  %p632_p5 = por %p631_p6, %p630_p2 }
  0x3c   : > { %p634_p11 = por %p633_p10, %p632_p5 }
  0x3e   : > { %p635_p1 = pnand %p634_p11, %p628_p4 }
  0x40   : > { %638 = shalt.err (!%p635_p1)
}
  0x41   : > { %s639_s17 = scalar_lea.vmem %s887_s15, 2048  ;;  %s743_s30 = smov [#allocation5]  }
  0x42   : > { %p640_p0 = scmp.ne.s32.totalorder %s887_s15, %s639_s17  ;;  %s644_s27 = sshll.u32 %s743_s30, 4  ;;  %s645_s27 = int_to_ptr.vmem [resolvable:$false] %s644_s27 }
  0x43   : > { %s646_s6 = scalar_lea.vmem %s645_s27, 4096  ;;  %p647_p7 = scmp.lt.s32.totalorder %s887_s15, %s645_s27 }
  0x44   : > { %p642_p9 = pnand %p640_p0, %p626_p12  ;;  %p648_p13 = scmp.lt.s32.totalorder %s646_s6, %s639_s17 }
  0x46   : > { %p643_p3 = pneg %p642_p9  ;;  %p649_p2 = por %p648_p13, %p647_p7 }
  0x48   : > { %p650_p6 = pnand %p649_p2, %p643_p3 }
  0x4a   : > { %653 = shalt.err (!%p650_p6)
}
  0x4b   : > { %s744_s8 = smov 256   ;;  %s745_s16 = smov 128  }
  0x4c   : > { %s746_s19 = smov 8   ;;  %p1024_p12 = scmp.ne.s32.totalorder %s1018_s23, 0 }
  0x4d   : > { %532 = dma.hbm_to_vmem [thread:$0]  (!%p1023_p8), %s880_s7, 2048, %s887_s15, %s889_s29, %s744_s8, %s745_s16, %s746_s19  }
  0x4e   : > { %179 = sbr.rel (%p1024_p12) target bundleno = 350 (0x15e), region = 28  ;;  %p1025_p4 = scmp.ne.s32.totalorder (!%p1024_p12), %s1013_s18, 0 }
  0x55   : > { %707 = dma.done.wait (%p1025_p4), [#allocation3], 128  }
  0x56   : > { %709 = vsyncadd (%p1025_p4), [#allocation3], 4294967168  ;;  %s924_s24 = sand.u32 1, %s724_s10   ;;  %p1026_p8 = scmp.ne.s32.totalorder %s1015_s20, 0 }
  0x57   : > { %s435_s3 = sshll.u32 %s924_s24, 7  ;;  %s186_s4 = scalar_lea.sflag [#allocation6], %s924_s24 }
  0x58   : > { %s928_s5 = scalar_lea.vmem [#allocation5], %s435_s3 }
  0x59   : > { %711 = dma.done.wait (%p1026_p8), %s186_s4, 2048  }
  0x5a   : > { %713 = vsyncadd (%p1026_p8), %s186_s4, 4294965248  ;;  %v747_v0 = vmov 0.0|0.0   ;;  %vm748_vm0 = vmmov 0   ;;  %v749_v1 = vmov 0.0   ;;  %v212_v2 = vld [vmem:[%s928_s5] sm:$0xff]  ;;  %v213_v3 = vld [vmem:[%s928_s5 + $0x8] sm:$0xff] }
  0x5b   : > { %493 = vmatprep.subr.bf16.mxu0 %v747_v0  ;;  %490 = vmatprep.mubr.msk.f32.mxu0 %vm748_vm0, %v749_v1  ;;  %v214_v4 = vld [vmem:[%s928_s5 + $0x10] sm:$0xff]  ;;  %v494_v5 = vpack.c.bf16 %v213_v3, %v212_v2  ;;  %v215_v6 = vld [vmem:[%s928_s5 + $0x18] sm:$0xff]  ;;  %v216_v8 = vld [vmem:[%s928_s5 + $0x20] sm:$0xff]  ;;  %s436_s18 = sshll.u32 %s924_s24, 3  ;;  %s438_s26 = sshll.u32 %s732_s12, 7 }
  0x5c   : > { %v497_v7 = vpack.c.bf16 %v215_v6, %v214_v4  ;;  %v217_v9 = vld [vmem:[%s928_s5 + $0x28] sm:$0xff]  ;;  %v218_v11 = vld [vmem:[%s928_s5 + $0x30] sm:$0xff]  ;;  %v219_v12 = vld [vmem:[%s928_s5 + $0x38] sm:$0xff]  ;;  %s209_s20 = scalar_lea.vmem [#allocation7], %s436_s18  ;;  %s957_s29 = scalar_lea.hbm %s1006_s2, %s438_s26 }
  0x5d   : > { %495 = vmatpush3.bf16.msra.mxu0 %v494_v5  ;;  %v500_v10 = vpack.c.bf16 %v217_v9, %v216_v8  ;;  %v503_v13 = vpack.c.bf16 %v219_v12, %v218_v11  ;;  %v220_v14 = vld [vmem:[%s928_s5 + $0x40] sm:$0xff]  ;;  %v221_v15 = vld [vmem:[%s928_s5 + $0x48] sm:$0xff]  ;;  %v222_v17 = vld [vmem:[%s928_s5 + $0x50] sm:$0xff]  ;;  %s326_s23 = sshll.u32 %s209_s20, 4  ;;  %s311_s17 = scalar_lea.sflag [#allocation4], %s924_s24  ;;  %s952_s23 = int_to_ptr.vmem [resolvable:$true] %s326_s23 }
  0x5e   : > { %496 = vmatprep.subr.bf16.mxu0 %v747_v0  ;;  %v506_v16 = vpack.c.bf16 %v221_v15, %v220_v14  ;;  %v223_v18 = vld [vmem:[%s928_s5 + $0x58] sm:$0xff]  ;;  %v224_v20 = vld [vmem:[%s928_s5 + $0x60] sm:$0xff]  ;;  %v225_v21 = vld [vmem:[%s928_s5 + $0x68] sm:$0xff]  ;;  %s654_s30 = scalar_lea.vmem %s952_s23, 128  ;;  %p1027_p10 = scmp.ne.s32.totalorder %s1016_s21, 0 }
  0x5f   : > { %v509_v19 = vpack.c.bf16 %v223_v18, %v222_v17  ;;  %v512_v22 = vpack.c.bf16 %v225_v21, %v224_v20  ;;  %v226_v23 = vld [vmem:[%s928_s5 + $0x70] sm:$0xff]  ;;  %v227_v24 = vld [vmem:[%s928_s5 + $0x78] sm:$0xff]  ;;  %p655_p5 = scmp.ne.s32.totalorder %s952_s23, %s654_s30  ;;  %s750_s12 = smov [#allocation7]  }
  0x60   : > { %v515_v25 = vpack.c.bf16 %v227_v24, %v226_v23  ;;  %v211_v26 = vld [vmem:[#allocation2] sm:$0xff]  ;;  %s658_s27 = sshll.u32 %s750_s12, 4  ;;  %s659_s27 = int_to_ptr.vmem [resolvable:$false] %s658_s27 }
  0x61   : > { %498 = vmatpush3.bf16.msra.mxu0 %v497_v7  ;;  %p656_p11 = pnand %p655_p5, %p1027_p10  ;;  %s660_s6 = scalar_lea.vmem %s659_s27, 256 }
  0x62   : > { %499 = vmatprep.subr.bf16.mxu0 %v747_v0  ;;  %p661_p0 = scmp.lt.s32.totalorder %s952_s23, %s659_s27  ;;  %p662_p9 = scmp.lt.s32.totalorder %s660_s6, %s654_s30 }
  0x63   : > { %p657_p1 = pneg %p656_p11 }
  0x64   : > { %p663_p3 = por %p662_p9, %p661_p0 }
  0x65   : > { %501 = vmatpush3.bf16.msra.mxu0 %v500_v10 }
  0x66   : > { %502 = vmatprep.subr.bf16.mxu0 %v747_v0  ;;  %p664_p7 = pnand %p663_p3, %p657_p1 }
  0x69   : > { %504 = vmatpush3.bf16.msra.mxu0 %v503_v13 }
  0x6a   : > { %505 = vmatprep.subr.bf16.mxu0 %v747_v0 }
  0x6d   : > { %507 = vmatpush3.bf16.msra.mxu0 %v506_v16 }
  0x6e   : > { %508 = vmatprep.subr.bf16.mxu0 %v747_v0 }
  0x71   : > { %510 = vmatpush3.bf16.msra.mxu0 %v509_v19 }
  0x72   : > { %511 = vmatprep.subr.bf16.mxu0 %v747_v0 }
  0x75   : > { %513 = vmatpush3.bf16.msra.mxu0 %v512_v22 }
  0x76   : > { %514 = vmatprep.subr.bf16.mxu0 %v747_v0 }
  0x79   : > { %516 = vmatpush3.bf16.msra.mxu0 %v515_v25 }
  0x7c   : > { %491 = vmatmul.mubr.f32.vlgmr.msra.gmra.mrb[0].mxu0 %v211_v26 }
 0x14f   : > { %v294_v27 = vpop.f32.mrb[0].mxu0 }
 0x150   : > { %302 = vst [vmem:[%s209_s20] sm:$0xff] %v294_v27  ;;  %v492_v28 = vpop.f32.mrb[1].mxu0 }
 0x151   : > { %667 = shalt.err (!%p664_p7)
}
 0x152   : > { %s668_s8 = scalar_lea.hbm %s957_s29, 128  ;;  %s672_s24 = scalar_lea.hbm %s1006_s2, 256 }
 0x153   : > { %p669_p13 = scmp.ne.s32.totalorder %s957_s29, %s668_s8  ;;  %p673_p12 = scmp.lt.u32.totalorder %s957_s29, %s1006_s2 }
 0x154   : > { %p674_p4 = scmp.lt.u32.totalorder %s672_s24, %s668_s8  ;;  %p676_p5 = scmp.lt.u32.totalorder %s668_s8, %s957_s29 }
 0x155   : > { %p670_p2 = pnand %p669_p13, %p1027_p10 }
 0x156   : > { %p675_p8 = por %p674_p4, %p673_p12 }
 0x157   : > { %p671_p6 = pneg %p670_p2 }
 0x158   : > { %p677_p11 = por %p676_p5, %p675_p8 }
 0x15a   : > { %p678_p1 = pnand %p677_p11, %p671_p6 }
 0x15c   : > { %681 = shalt.err (!%p678_p1)
}
 0x15d   : > { %523 = dma.vmem_to_hbm [thread:$0]  (%p1027_p10), %s952_s23, 128, %s957_s29, %s311_s17  }
 0x15e PF: > { %s338_s5 = sand.u32 1, %s720_s9   ;;  %p1028_p0 = scmp.ne.s32.totalorder %s1017_s22, 0 }
 0x15f   : > { %p1029_p9 = scmp.ge.s32.totalorder %s740_s14, 2  ;;  %s339_s18 = scalar_lea.sflag [#allocation4], %s338_s5 }
 0x161   : > { %p534_p3 = pnand %p1029_p9, %p1028_p0 }
 0x163   : > { %715 = dma.done.wait (!%p534_p3), %s339_s18, 128  }
 0x164   : > { %717 = vsyncadd (!%p534_p3), %s339_s18, 4294967168  ;;  %s19_s14 = sadd.s32 1, %s740_s14   ;;  %s1030_s9 = smov %s724_s10 }
 0x165   : > { %p16_p7 = scmp.ge.s32.totalorder %s19_s14, 4   ;;  %s1031_s10 = smov %s728_s11 }
 0x166   : > { %s1032_s11 = smov %s885_s25  ;;  %s1033_s12 = smov %s736_s13 }
 0x167   : > { %s1034_s13 = smov %s1036_s28  ;;  %18 = sbr.rel (!%p16_p7) target bundleno = 7 (0x7), region = 87 }
 0x16e   :  { %344 = vsyncpa [#allocation3], 1 }
 0x16f   :  { %346 = vsyncpa [#allocation3 + $0x1], 1 }
 0x170   :  { %347 = vsyncpa [#allocation6], 1 }
 0x171   :  { %349 = vsyncpa [#allocation6 + $0x1], 1 }
 0x172   :  { %350 = vsyncpa [#allocation4], 1 }
 0x173   :  { %352 = vsyncpa [#allocation4 + $0x1], 1 }

</bundles_post_ra>
